<compile_context>
chip_gen: v7x
topology: tpu7x:2x2x1
jax: 0.10.0
libtpu: 0.0.40
codegen_flags: <defaults>
</compile_context>

<pallas_src>
import functools

import jax
import jax.numpy as jnp
from jax.experimental import pallas as pl
from jax.experimental.pallas import tpu as pltpu


def _se_block_kernel(x_ref, w1_ref, b1_ref, w2_ref, b2_ref, o_ref, *, inv_l):
    # x_ref: (TB, C, L) tile covering TB batch elements (unpadded L).
    xf = x_ref[...].astype(jnp.float32)               # (TB, C, L) f32 temp

    # --- Squeeze: mean / max over L (no masks: nothing is padded) ----------
    avg = jnp.sum(xf, axis=-1) * inv_l                # (TB, C)
    mx = jnp.max(xf, axis=-1)                         # (TB, C)

    # --- Excitation MLP (tiny; flops negligible) ---------------------------
    w1 = w1_ref[...]                                  # (C, H) native dtype
    b1 = b1_ref[...]                                  # (1, H) f32
    w2 = w2_ref[...]                                  # (H, C) native dtype
    b2 = b2_ref[...]                                  # (1, C) f32

    wdt = w1.dtype                                    # bf16 weights -> bf16 MXU path
    h_avg = jnp.maximum(
        jnp.dot(avg.astype(wdt), w1, preferred_element_type=jnp.float32) + b1, 0.0)
    h_max = jnp.maximum(
        jnp.dot(mx.astype(wdt), w1, preferred_element_type=jnp.float32) + b1, 0.0)
    # fc(avg) + fc(max) == (h_avg + h_max) @ w2 + 2*b2  (second layer is affine)
    y = jnp.dot((h_avg + h_max).astype(wdt), w2,
                preferred_element_type=jnp.float32) + 2.0 * b2
    gate = jax.nn.sigmoid(y).astype(o_ref.dtype)      # (TB, C)

    # --- Excite: re-read x (don't hold it live across the FC) and scale ----
    o_ref[...] = x_ref[...] * gate[:, :, None]


def _vmem_limit_bytes():
    """Generation-aware scoped-VMEM limit (v5e/v6e: 128 MiB phys, v7x: 64)."""
    try:
        cap = int(pltpu.get_tpu_info().vmem_capacity_bytes)
    except Exception:  # no info available -> assume the tightest (v7x, 64 MiB)
        cap = 64 << 20
    return int(min(cap * 3 // 4, 96 << 20))


_MIN_TILE_BYTES = 2 << 20  # ~2 MiB tiles already amortize the ~0.35 us/step cost


def _choose_tb(B, C, L, itemsize, vmem_limit):
    """Batch-tile size: largest that fits the per-step VMEM footprint, then
    shrunk toward >= 8 even grid steps when tiles stay >= ~2 MiB."""
    row_bytes = C * L * itemsize
    # Per-step footprint: in + out tiles, each double-buffered (4x), plus ~2
    # tiles of f32 temporaries inside the kernel (cast + reduction temps).
    per_row = 4 * row_bytes + 2 * C * L * 4
    budget = max(vmem_limit - (4 << 20), per_row)      # headroom for weights/misc
    tb = max(1, min(B, budget // per_row))
    if per_row > budget:
        # TODO(synk): very large C*L needs a two-pass (L-tiled reduce, then
        # gate-apply) structure; not needed for these shapes.
        return 1

    # Prefer more, evenly-sized steps (>= 4 per TensorCore on v7x) as long as
    # tiles stay large enough -- the kernel is mem-bound, extra steps are free.
    for steps in (8, 4, 2):
        cand = (B + steps - 1) // steps
        if cand <= tb and cand * row_bytes >= _MIN_TILE_BYTES:
            tb = cand
            break

    # Sublane-align the pooled (TB, C) stack when possible.
    if tb >= 8:
        tb -= tb % 8
    return max(1, tb)


def se_block(x, w1, b1, w2, b2):
    """x: (B, C, L); w1: (C, H); b1: (H,); w2: (H, C); b2: (C,)."""
    B, C, L = x.shape
    H = w1.shape[1]
    itemsize = jnp.dtype(x.dtype).itemsize

    vmem_limit = _vmem_limit_bytes()
    TB = _choose_tb(B, C, L, itemsize, vmem_limit)
    grid = (pl.cdiv(B, TB),)                           # partial tail block is OK:
    # gate math is row-wise, OOB output rows are dropped by Pallas.

    b1_2d = b1.reshape(1, H).astype(jnp.float32)
    b2_2d = b2.reshape(1, C).astype(jnp.float32)
    w_itemsize = jnp.dtype(w1.dtype).itemsize

    kernel = functools.partial(_se_block_kernel, inv_l=1.0 / L)

    cost = pl.CostEstimate(
        flops=2 * B * C * L                            # pooled reductions + excite mul
              + 2 * B * (2 * C * H + H * C)            # the FC matmuls
              + 6 * B * C,
        transcendentals=2 * B * C,                     # sigmoid ~ exp + recip
        bytes_accessed=2 * B * C * L * itemsize
                       + (C * H + H * C) * w_itemsize + 4 * (H + C),
    )

    return pl.pallas_call(
        kernel,
        out_shape=jax.ShapeDtypeStruct((B, C, L), x.dtype),
        grid_spec=pltpu.PrefetchScalarGridSpec(
            num_scalar_prefetch=0,
            grid=grid,
            in_specs=[
                pl.BlockSpec((TB, C, L), lambda b: (b, 0, 0)),  # x tile (full C, L)
                pl.BlockSpec((C, H), lambda b: (0, 0)),         # w1 (full)
                pl.BlockSpec((1, H), lambda b: (0, 0)),         # b1 (full)
                pl.BlockSpec((H, C), lambda b: (0, 0)),         # w2 (full)
                pl.BlockSpec((1, C), lambda b: (0, 0)),         # b2 (full)
            ],
            out_specs=pl.BlockSpec((TB, C, L), lambda b: (b, 0, 0)),
        ),
        compiler_params=pltpu.CompilerParams(
            dimension_semantics=("parallel",),
            vmem_limit_bytes=vmem_limit,
        ),
        cost_estimate=cost,
    )(x, w1, b1_2d, w2, b2_2d)


def reference_se_block(x, w1, b1, w2, b2):
    """Pure-JAX reference mirroring the PyTorch forward."""
    avg = jnp.mean(x, axis=-1)            # (B, C)
    mx = jnp.max(x, axis=-1)              # (B, C)

    def fc(v):
        return jnp.maximum(v @ w1 + b1, 0.0) @ w2 + b2

    gate = jax.nn.sigmoid(fc(avg) + fc(mx))           # (B, C)
    return x * gate[:, :, None]


if __name__ == "__main__":
    # Small shapes consistent with SEBlock on a 1-D feature map.
    B, C, L = 2, 4, 16
    reduction_ratio = 2
    H = C // reduction_ratio

    key = jax.random.PRNGKey(0)
    kx, kw1, kb1, kw2, kb2 = jax.random.split(key, 5)

    x = jax.random.normal(kx, (B, C, L), dtype=jnp.float32)

    # nn.Linear(C, H): weight (H, C), bias (H); stored transposed (in, out).
    bound1 = 1.0 / jnp.sqrt(C)
    w1 = jax.random.uniform(kw1, (C, H), jnp.float32, -bound1, bound1)
    b1 = jax.random.uniform(kb1, (H,), jnp.float32, -bound1, bound1)

    # nn.Linear(H, C): weight (C, H), bias (C); stored transposed (in, out).
    bound2 = 1.0 / jnp.sqrt(H)
    w2 = jax.random.uniform(kw2, (H, C), jnp.float32, -bound2, bound2)
    b2 = jax.random.uniform(kb2, (C,), jnp.float32, -bound2, bound2)

    out = se_block(x, w1, b1, w2, b2)
    out = jax.block_until_ready(out)

    ref = reference_se_block(x, w1, b1, w2, b2)
    assert out.shape == (B, C, L)
    assert jnp.allclose(out, ref, atol=1e-5, rtol=1e-5), "mismatch vs reference"

    print("KERNEL_OK")
</pallas_src>

<mosaic_0001>
module attributes {stable_mosaic.version = 11 : i64} {
  func.func @_se_block_kernel(%arg0: i32, %arg1: memref<2x4x16xf32, #tpu.memory_space<vmem>>, %arg2: memref<4x2xf32, #tpu.memory_space<vmem>>, %arg3: memref<1x2xf32, #tpu.memory_space<vmem>>, %arg4: memref<2x4xf32, #tpu.memory_space<vmem>>, %arg5: memref<1x4xf32, #tpu.memory_space<vmem>>, %arg6: memref<2x4x16xf32, #tpu.memory_space<vmem>>) attributes {dimension_semantics = [#tpu.dimension_semantics<parallel>], iteration_bounds = array<i64: 1>, scalar_prefetch = 0 : i64, scratch_operands = 0 : i64, tpu.core_type = #tpu.core_type<tc>, window_params = [{transform_indices = @transform_0, window_bounds = array<i64: 2, 4, 16>}, {pipeline_mode = #tpu.pipeline_mode<synchronous>, transform_indices = @transform_1, window_bounds = array<i64: 4, 2>}, {pipeline_mode = #tpu.pipeline_mode<synchronous>, transform_indices = @transform_2, window_bounds = array<i64: 1, 2>}, {pipeline_mode = #tpu.pipeline_mode<synchronous>, transform_indices = @transform_3, window_bounds = array<i64: 2, 4>}, {pipeline_mode = #tpu.pipeline_mode<synchronous>, transform_indices = @transform_4, window_bounds = array<i64: 1, 4>}, {transform_indices = @transform_5, window_bounds = array<i64: 2, 4, 16>}]} {
    %c0 = arith.constant 0 : index
    %c0_0 = arith.constant 0 : index
    %c0_1 = arith.constant 0 : index
    %0 = vector.load %arg1[%c0, %c0_0, %c0_1] : memref<2x4x16xf32, #tpu.memory_space<vmem>>, vector<2x4x16xf32>
    %cst = arith.constant dense<0.000000e+00> : vector<2x4xf32>
    %1 = vector.multi_reduction <add>, %0, %cst [2] : vector<2x4x16xf32> to vector<2x4xf32>
    %cst_2 = arith.constant 6.250000e-02 : f32
    %2 = vector.broadcast %cst_2 : f32 to vector<2x4xf32>
    %3 = arith.mulf %1, %2 : vector<2x4xf32>
    %cst_3 = arith.constant dense<0xFF800000> : vector<2x4xf32>
    %4 = vector.multi_reduction <maximumf>, %0, %cst_3 [2] : vector<2x4x16xf32> to vector<2x4xf32>
    %c0_4 = arith.constant 0 : index
    %c0_5 = arith.constant 0 : index
    %5 = vector.load %arg2[%c0_4, %c0_5] : memref<4x2xf32, #tpu.memory_space<vmem>>, vector<4x2xf32>
    %c0_6 = arith.constant 0 : index
    %c0_7 = arith.constant 0 : index
    %6 = vector.load %arg3[%c0_6, %c0_7] : memref<1x2xf32, #tpu.memory_space<vmem>>, vector<1x2xf32>
    %c0_8 = arith.constant 0 : index
    %c0_9 = arith.constant 0 : index
    %7 = vector.load %arg4[%c0_8, %c0_9] : memref<2x4xf32, #tpu.memory_space<vmem>>, vector<2x4xf32>
    %c0_10 = arith.constant 0 : index
    %c0_11 = arith.constant 0 : index
    %8 = vector.load %arg5[%c0_10, %c0_11] : memref<1x4xf32, #tpu.memory_space<vmem>>, vector<1x4xf32>
    %cst_12 = arith.constant dense<0.000000e+00> : vector<2x2xf32>
    %9 = tpu.matmul %3, %5, %cst_12 {dimension_numbers = #tpu.dot_dimension_numbers<[1], [0], [0], [1], [0, 0, 1, 1], [], []>} : vector<2x4xf32>, vector<4x2xf32>, vector<2x2xf32> -> vector<2x2xf32>
    %10 = vector.broadcast %6 : vector<1x2xf32> to vector<2x2xf32>
    %11 = arith.addf %9, %10 : vector<2x2xf32>
    %cst_13 = arith.constant 0.000000e+00 : f32
    %12 = vector.broadcast %cst_13 : f32 to vector<2x2xf32>
    %13 = arith.maximumf %11, %12 : vector<2x2xf32>
    %cst_14 = arith.constant dense<0.000000e+00> : vector<2x2xf32>
    %14 = tpu.matmul %4, %5, %cst_14 {dimension_numbers = #tpu.dot_dimension_numbers<[1], [0], [0], [1], [0, 0, 1, 1], [], []>} : vector<2x4xf32>, vector<4x2xf32>, vector<2x2xf32> -> vector<2x2xf32>
    %15 = vector.broadcast %6 : vector<1x2xf32> to vector<2x2xf32>
    %16 = arith.addf %14, %15 : vector<2x2xf32>
    %cst_15 = arith.constant 0.000000e+00 : f32
    %17 = vector.broadcast %cst_15 : f32 to vector<2x2xf32>
    %18 = arith.maximumf %16, %17 : vector<2x2xf32>
    %19 = arith.addf %13, %18 : vector<2x2xf32>
    %cst_16 = arith.constant dense<0.000000e+00> : vector<2x4xf32>
    %20 = tpu.matmul %19, %7, %cst_16 {dimension_numbers = #tpu.dot_dimension_numbers<[1], [0], [0], [1], [0, 0, 1, 1], [], []>} : vector<2x2xf32>, vector<2x4xf32>, vector<2x4xf32> -> vector<2x4xf32>
    %cst_17 = arith.constant 2.000000e+00 : f32
    %21 = vector.broadcast %cst_17 : f32 to vector<1x4xf32>
    %22 = arith.mulf %21, %8 : vector<1x4xf32>
    %23 = vector.broadcast %22 : vector<1x4xf32> to vector<2x4xf32>
    %24 = arith.addf %20, %23 : vector<2x4xf32>
    %25 = arith.negf %24 : vector<2x4xf32>
    %26 = math.exp %25 : vector<2x4xf32>
    %cst_18 = arith.constant 1.000000e+00 : f32
    %27 = vector.broadcast %cst_18 : f32 to vector<2x4xf32>
    %28 = arith.addf %27, %26 : vector<2x4xf32>
    %29 = arith.divf %27, %28 : vector<2x4xf32>
    %c0_19 = arith.constant 0 : index
    %c0_20 = arith.constant 0 : index
    %c0_21 = arith.constant 0 : index
    %30 = vector.load %arg1[%c0_19, %c0_20, %c0_21] : memref<2x4x16xf32, #tpu.memory_space<vmem>>, vector<2x4x16xf32>
    %31 = vector.shape_cast %29 : vector<2x4xf32> to vector<2x4x1xf32>
    %32 = vector.broadcast %31 : vector<2x4x1xf32> to vector<2x4x16xf32>
    %33 = arith.mulf %30, %32 : vector<2x4x16xf32>
    %c0_22 = arith.constant 0 : index
    %c0_23 = arith.constant 0 : index
    %c0_24 = arith.constant 0 : index
    %34 = vector.load %arg6[%c0_22, %c0_23, %c0_24] : memref<2x4x16xf32, #tpu.memory_space<vmem>>, vector<2x4x16xf32>
    tpu.vector_store %arg6[%c0_22, %c0_23, %c0_24], %33 {strides = array<i32>} : memref<2x4x16xf32, #tpu.memory_space<vmem>>, vector<2x4x16xf32>,
    return
  }
  func.func @transform_0(%arg0: i32) -> (i32, i32, i32) {
    %c0_i32 = arith.constant 0 : i32
    %c0_i32_0 = arith.constant 0 : i32
    %c0_i32_1 = arith.constant 0 : i32
    return %arg0, %c0_i32, %c0_i32_0 : i32, i32, i32
  }
  func.func @transform_1(%arg0: i32) -> (i32, i32) {
    %c0_i32 = arith.constant 0 : i32
    %c0_i32_0 = arith.constant 0 : i32
    %c0_i32_1 = arith.constant 0 : i32
    return %c0_i32, %c0_i32_0 : i32, i32
  }
  func.func @transform_2(%arg0: i32) -> (i32, i32) {
    %c0_i32 = arith.constant 0 : i32
    %c0_i32_0 = arith.constant 0 : i32
    %c0_i32_1 = arith.constant 0 : i32
    return %c0_i32, %c0_i32_0 : i32, i32
  }
  func.func @transform_3(%arg0: i32) -> (i32, i32) {
    %c0_i32 = arith.constant 0 : i32
    %c0_i32_0 = arith.constant 0 : i32
    %c0_i32_1 = arith.constant 0 : i32
    return %c0_i32, %c0_i32_0 : i32, i32
  }
  func.func @transform_4(%arg0: i32) -> (i32, i32) {
    %c0_i32 = arith.constant 0 : i32
    %c0_i32_0 = arith.constant 0 : i32
    %c0_i32_1 = arith.constant 0 : i32
    return %c0_i32, %c0_i32_0 : i32, i32
  }
  func.func @transform_5(%arg0: i32) -> (i32, i32, i32) {
    %c0_i32 = arith.constant 0 : i32
    %c0_i32_0 = arith.constant 0 : i32
    %c0_i32_1 = arith.constant 0 : i32
    return %arg0, %c0_i32, %c0_i32_0 : i32, i32, i32
  }
}

</mosaic_0001>

<bundles_post_ra>
// kernel: tpu_custom_call.1
= control target key start
LH: loop header
LB: loop body
LE: loop exit
PB: predicated region body
PF: predicated region fallthrough
CT: control target
= control target key end

     0   :  { %10 = vsyncpa [#allocation3], 0  ;;  %s549_s0 = inlined_call_operand.hbm [shape: f32[2,4,16], index: 0, kind: input, shape index: {}]   ;;  %s550_s1 = inlined_call_operand.vmem [shape: f32[4,2], index: 1, kind: input, shape index: {}]   ;;  %s551_s2 = inlined_call_operand.vmem [shape: f32[1,2], index: 2, kind: input, shape index: {}]   ;;  %s552_s3 = inlined_call_operand.vmem [shape: f32[2,4], index: 3, kind: input, shape index: {}]   ;;  %s553_s4 = inlined_call_operand.vmem [shape: f32[1,4], index: 4, kind: input, shape index: {}]   ;;  %s554_s5 = inlined_call_operand.hbm [shape: f32[2,4,16], index: 5, kind: output, shape index: {}]  }
   0x1   :  { %11 = vsyncpa [#allocation4], 0  ;;  %s452_s18 = smov [#allocation2]   ;;  %s404_s22 = scalar_lea.hbm %s549_s0, 128 }
   0x2   :  { %s17_s19 = sshll.u32 %s452_s18, 4  ;;  %p405_p0 = scmp.ne.s32.totalorder %s549_s0, %s404_s22  ;;  %s18_s19 = int_to_ptr.vmem [resolvable:$true] %s17_s19 }
   0x3   :  { %p408_p1 = scmp.lt.u32.totalorder %s404_s22, %s549_s0 }
   0x5   :  { %p410_p2 = pnand %p408_p1, %p405_p0 }
   0x7   :  { %413 = shalt.err (!%p410_p2)
}
   0x8   :  { %s414_s27 = scalar_lea.vmem %s18_s19, 128  ;;  %p419_p4 = scmp.lt.s32.totalorder %s18_s19, %s18_s19 }
   0x9   :  { %p415_p3 = scmp.ne.s32.totalorder %s18_s19, %s414_s27  ;;  %p420_p5 = scmp.lt.s32.totalorder %s414_s27, %s414_s27 }
   0xb   :  { %p421_p6 = por %p420_p5, %p419_p4 }
   0xd   :  { %p422_p7 = pnand %p421_p6, %p415_p3 }
   0xf   :  { %425 = shalt.err (!%p422_p7)
}
  0x10   :  { %s453_s28 = smov 64   ;;  %s454_s29 = smov 4  }
  0x11   :  { %23 = dma.hbm_to_vmem [thread:$0]  %s549_s0, 128, %s18_s19, [#allocation3], %s453_s28, %s453_s28, %s454_s29  }
  0x12   :  { %448 = dma.done.wait [#allocation3], 128  }
  0x13   :  { %449 = vsyncadd [#allocation3], 4294967168  ;;  %vm37_vm0 = vcmask 125952   ;;  %v503_v0 = vld [vmem:[#allocation2] sm:$0xf]  ;;  %v455_v6 = vmov 0.0   ;;  %v64_v8 = vlaneseq }
  0x14   :  { %v505_v1 = vld [vmem:[#allocation2 + $0x4] sm:$0xf]  ;;  %v46_v2 = vsel %vm37_vm0, %v503_v0, -inf  ;;  %v38_v3 = vsel %vm37_vm0, %v503_v0, 0.0  ;;  %384 = vmatprep.subr.mxu1 %v455_v6  ;;  %v52_v7 = vld [vmem:[%s550_s1] sm:$0xf]  ;;  %379 = vmatprep.subr.mxu0 %v455_v6 }
  0x15   :  { %47 = vmax.xlane.f32.xlu1 %v46_v2  ;;  %39 = vadd.xlane.f32.xlu0 %v38_v3  ;;  %v49_v4 = vsel %vm37_vm0, %v505_v1, -inf  ;;  %v41_v5 = vsel %vm37_vm0, %v505_v1, 0.0  ;;  %vm79_vm1 = vcmask 1043456   ;;  %vm456_vm2 = vmmov 0   ;;  %v54_v24 = vld [vmem:[%s552_s3] sm:$0x3] }
  0x16   :  { %385 = vmatpush3.msk.msra.mxu1 %vm79_vm1, %v52_v7  ;;  %386 = vmatprep.mubr.msk.f32.mxu1 %vm456_vm2, %v455_v6  ;;  %v65_v9 = vand.u32 127, %v64_v8  ;;  %v67_v10 = vshrl.u32 %v64_v8, 7  ;;  %vm74_vm3 = vcmask 1041409   ;;  %vm76_vm4 = vcmask 31744   ;;  %v365_v25 = vld [vmem:[%s551_s2] ss:$0 sm:$0xff] }
  0x17   :  { %380 = vmatpush3.msk.msra.mxu0 %vm79_vm1, %v52_v7  ;;  %381 = vmatprep.mubr.msk.f32.mxu0 %vm456_vm2, %v455_v6  ;;  %vm250_vm5 = vcmask 1041408   ;;  %vm246_vm6 = vcmask 15360   ;;  %v55_v35 = vld [vmem:[%s553_s4] sm:$0x1]  ;;  %s457_s2 = smov [#allocation5]  }
  0x18   :  { %389 = vmatprep.subr.mxu0 %v455_v6  ;;  %v68_v13 = vsub.s32 %v65_v9, %v67_v10  ;;  %v239_v36 = vmul.f32 2.0, %v55_v35  ;;  %v243_v37 = vsub.s32 0, %v67_v10  ;;  %v339_v45 = vsub.s32 1, %v67_v10  ;;  %s353_s3 = sshll.u32 %s457_s2, 4  ;;  %s354_s3 = int_to_ptr.vmem [resolvable:$true] %s353_s3 }
  0x19   :  { %50 = vmax.xlane.f32.xlu1 %v49_v4  ;;  %42 = vadd.xlane.f32.xlu0 %v41_v5  ;;  %s426_s4 = scalar_lea.vmem %s354_s3, 128  ;;  %p431_p9 = scmp.lt.s32.totalorder %s354_s3, %s354_s3 }
  0x1a   :  { %v244_v38 = vrot.slane %v239_v36, %v243_v37  ;;  %p427_p8 = scmp.ne.s32.totalorder %s354_s3, %s426_s4  ;;  %p432_p10 = scmp.lt.s32.totalorder %s426_s4, %s426_s4 }
  0x1c   :  { %p433_p11 = por %p432_p10, %p431_p9 }
  0x1e   :  { %p434_p12 = pnand %p433_p11, %p427_p8 }
  0xa2   :  { %v48_v11 = vpop.xlane.xlu1 %47  ;;  %v40_v12 = vpop.xlane.xlu0 %39 }
  0xa3   :  { %v44_v14 = vmul.f32 0.0625, %v40_v12  ;;  %v159_v17 = vrot.slane %v48_v11, %v68_v13 }
  0xa5   :  { %v69_v20 = vrot.slane %v44_v14, %v68_v13 }
  0xa6   :  { %v51_v15 = vpop.xlane.xlu1 %50  ;;  %v43_v16 = vpop.xlane.xlu0 %42 }
  0xa7   :  { %v163_v18 = vrot.slane %v51_v15, %v68_v13  ;;  %v45_v19 = vmul.f32 0.0625, %v43_v16 }
  0xa9   :  { %v73_v21 = vrot.slane %v45_v19, %v68_v13  ;;  %v164_v22 = vsel %vm74_vm3, %v163_v18, %v159_v17 }
  0xaa   :  { %387 = vmatmul.mubr.msk.f32.vlgmr.msra.gmra.mrb[0].mxu1 %vm76_vm4, %v164_v22 }
  0xab   :  { %v75_v23 = vsel %vm74_vm3, %v73_v21, %v69_v20 }
  0xac   :  { %382 = vmatmul.mubr.msk.f32.vlgmr.msra.gmra.mrb[0].mxu0 %vm76_vm4, %v75_v23 }
  0xad   :  { %391 = vmatprep.mubr.msk.f32.mxu0 %vm456_vm2, %v455_v6  ;;  %390 = vmatpush3.msk.msra.mxu0 %vm250_vm5, %v54_v24 }
 0x17d   :  { %v233_v26 = vpop.f32.mrb[0].mxu1 }
 0x17e   :  { %v234_v27 = vadd.f32 %v365_v25, %v233_v26  ;;  %v388_v28 = vpop.f32.mrb[1].mxu1 }
 0x17f   :  { %v149_v29 = vpop.f32.mrb[0].mxu0 }
 0x180   :  { %v150_v30 = vadd.f32 %v365_v25, %v149_v29  ;;  %v383_v31 = vpop.f32.mrb[1].mxu0  ;;  %v237_v32 = vmax.f32 %v234_v27, 0.0 }
 0x182   :  { %v153_v33 = vmax.f32 %v150_v30, 0.0 }
 0x184   :  { %v238_v34 = vadd.f32 %v237_v32, %v153_v33 }
 0x186   :  { %392 = vmatmul.mubr.msk.f32.vlgmr.msra.gmra.mrb[2].mxu0 %vm246_vm6, %v238_v34 }
 0x259   :  { %v320_v39 = vpop.f32.mrb[2].mxu0 }
 0x25a   :  { %v321_v40 = vadd.f32 %v320_v39, %v244_v38  ;;  %v393_v41 = vpop.f32.mrb[3].mxu0 }
 0x25c   :  { %v372_v42 = vmul.f32 -1.442695, %v321_v40 }
 0x25e   :  { %400 = vpow2.f32 %v372_v42 }
 0x268   :  { %v401_v43 = vpop.eup %400 }
 0x269   :  { %v327_v44 = vadd.f32 1.0, %v401_v43 }
 0x26b   :  { %402 = vrcp.f32 %v327_v44 }
 0x275   :  { %v403_v46 = vpop.eup %402 }
 0x276   :  { %v340_v47 = vrot.slane %v403_v46, %v339_v45  ;;  %v333_v48 = vrot.slane %v403_v46, %v243_v37 }
 0x278   :  { %342 = vbcast.lane.b32.xlu1 %v340_v47, 256  ;;  %335 = vbcast.lane.b32.xlu0 %v333_v48, 256 }
 0x2ea   :  { %v343_v49 = vpop.permute.xlu1 %342  ;;  %v336_v50 = vpop.permute.xlu0 %335 }
 0x2eb   :  { %v345_v51 = vmul.f32 %v343_v49, %v505_v1  ;;  %v344_v52 = vmul.f32 %v336_v50, %v503_v0 }
 0x2ed   :  { %347 = vst.msk [vmem:[#allocation5 + $0x4] sm:$0xf] %vm37_vm0, %v345_v51  ;;  %346 = vst.msk [vmem:[#allocation5] sm:$0xf] %vm37_vm0, %v344_v52 }
 0x2ee   :  { %437 = shalt.err (!%p434_p12)
}
 0x2ef   :  { %s438_s15 = scalar_lea.hbm %s554_s5, 128 }
 0x2f0   :  { %p439_p13 = scmp.ne.s32.totalorder %s554_s5, %s438_s15  ;;  %p442_p0 = scmp.lt.u32.totalorder %s438_s15, %s554_s5 }
 0x2f2   :  { %p444_p1 = pnand %p442_p0, %p439_p13 }
 0x2f4   :  { %447 = shalt.err (!%p444_p1)
}
 0x2f5   :  { %359 = dma.vmem_to_hbm [thread:$0]  %s354_s3, 128, %s554_s5, [#allocation4], %s453_s28, %s453_s28, %s454_s29  }
 0x2f6   :  { %450 = dma.done.wait [#allocation4], 128  }
 0x2f7   :  { %451 = vsyncadd [#allocation4], 4294967168 }
 0x2f8   :  { %363 = vsyncpa [#allocation3], 1 }
 0x2f9   :  { %364 = vsyncpa [#allocation4], 1 }

</bundles_post_ra>
